<compile_context>
chip_gen: v7x
topology: tpu7x:2x2x1
jax: 0.10.0
libtpu: 0.0.40
codegen_flags: <defaults>
</compile_context>

<pallas_src>
import functools
import math

import jax
import jax.numpy as jnp
import numpy as np
from jax import lax
from jax.experimental import pallas as pl
from jax.experimental.pallas import tpu as pltpu


# ----------------------------- Pallas kernel --------------------------------

def fused_mha_kernel(q_in_ref, k_in_ref, v_in_ref,
                     wqkv_ref, bqkv_ref, wo_ref, bo_ref,
                     o_ref, *, num_head, sm_scale):
    # q_in/k_in/v_in refs: (S, D) slice for one batch element.
    # wqkv: (3, D, D) stacked Q/K/V weights, bqkv: (3, 1, D) stacked biases.
    S, D = q_in_ref.shape
    hd = D // num_head

    def proj(x_ref, i):
        y = jnp.dot(x_ref[...], wqkv_ref[i],
                    preferred_element_type=jnp.float32)
        y = y + bqkv_ref[i]
        return jnp.maximum(y, 0.0)

    # Fold the 1/sqrt(dk) scale into q (small (S, D) tile, not the (S, S) scores).
    q = proj(q_in_ref, 0) * sm_scale
    k = proj(k_in_ref, 1)
    v = proj(v_in_ref, 2)

    wo = wo_ref[...]

    # y @ Wo == sum_h y_h @ Wo[h*hd:(h+1)*hd, :]  -> accumulate per head, no concat.
    acc = jnp.zeros((S, D), jnp.float32)
    for h in range(num_head):                      # static unroll, H is small
        sl = slice(h * hd, (h + 1) * hd)
        qh = q[:, sl]
        kh = k[:, sl]
        vh = v[:, sl]
        # scores = q_h @ k_h^T : contract last dims of both (no explicit transpose)
        s = lax.dot_general(qh, kh, (((1,), (1,)), ((), ())),
                            preferred_element_type=jnp.float32)
        m = jnp.max(s, axis=-1, keepdims=True)
        p = jnp.exp(s - m)
        denom = jnp.sum(p, axis=-1, keepdims=True)
        oh = jnp.dot(p, vh, preferred_element_type=jnp.float32)
        # deferred normalization on the small (S, hd) tile
        oh = oh * pl.reciprocal(denom, approx=False)
        acc = acc + jnp.dot(oh, wo[sl, :], preferred_element_type=jnp.float32)

    out = acc + bo_ref[...]
    o_ref[...] = jnp.maximum(out, 0.0).astype(o_ref.dtype)
    # TODO(synk): mask argument of forward() is None and dropout p=0 in this
    # config; the masked_fill and dropout paths are not emitted.


# ------------------------------ wrapper --------------------------------------

def multihead_attention(params, queries, keys, values, num_head):
    B, S, D = queries.shape
    assert D % num_head == 0
    hd = D // num_head

    wqkv = jnp.stack([params["Q"]["w"], params["K"]["w"], params["V"]["w"]])  # (3,D,D)
    bqkv = jnp.stack([params["Q"]["b"], params["K"]["b"],
                      params["V"]["b"]]).reshape(3, 1, D)                     # (3,1,D)
    wo = params["O"]["w"]                                                     # (D,D)
    bo = params["O"]["b"].reshape(1, D)                                       # (1,D)

    kernel = functools.partial(fused_mha_kernel, num_head=num_head,
                               sm_scale=1.0 / math.sqrt(hd))

    per_batch = pl.BlockSpec((None, S, D), lambda b: (b, 0, 0))

    def full(shape):
        return pl.BlockSpec(shape, lambda b, n=len(shape): (0,) * n)

    return pl.pallas_call(
        kernel,
        out_shape=jax.ShapeDtypeStruct((B, S, D), queries.dtype),
        grid=(B,),
        in_specs=[per_batch, per_batch, per_batch,
                  full((3, D, D)), full((3, 1, D)), full((D, D)), full((1, D))],
        out_specs=per_batch,
        compiler_params=pltpu.CompilerParams(
            dimension_semantics=("parallel",),      # batch axis shards across TCs
            vmem_limit_bytes=32 * 1024 * 1024,      # safe on v5e/v6e/v7x
        ),
    )(queries, keys, values, wqkv, bqkv, wo, bo)


# ------------------------- params / reference --------------------------------

def init_params(key, input_size):
    """Deterministic init mimicking nn.Linear's U(-1/sqrt(fan_in), 1/sqrt(fan_in)).
    Weights stored as (in, out) so forward is x @ W + b."""
    bound = 1.0 / math.sqrt(input_size)
    params = {}
    for name in ("Q", "K", "V", "O"):
        key, kw, kb = jax.random.split(key, 3)
        params[name] = {
            "w": jax.random.uniform(kw, (input_size, input_size), jnp.float32,
                                    minval=-bound, maxval=bound),
            "b": jax.random.uniform(kb, (input_size,), jnp.float32,
                                    minval=-bound, maxval=bound),
        }
    return params


def _reshape_to_batches(x, num_head):
    B, S, D = x.shape
    sub = D // num_head
    return x.reshape(B, S, num_head, sub).transpose(0, 2, 1, 3).reshape(B * num_head, S, sub)


def _reshape_from_batches(x, num_head):
    BH, S, sub = x.shape
    B = BH // num_head
    return x.reshape(B, num_head, S, sub).transpose(0, 2, 1, 3).reshape(B, S, num_head * sub)


def reference(params, queries, keys, values, num_head):
    def proj(name, x):
        return jax.nn.relu(x @ params[name]["w"] + params[name]["b"])

    q = _reshape_to_batches(proj("Q", queries), num_head)
    k = _reshape_to_batches(proj("K", keys), num_head)
    v = _reshape_to_batches(proj("V", values), num_head)
    dk = q.shape[-1]
    s = jnp.einsum("bqd,bkd->bqk", q, k) / math.sqrt(dk)
    a = jax.nn.softmax(s, axis=-1)
    y = _reshape_from_batches(jnp.einsum("bqk,bkd->bqd", a, v), num_head)
    return jax.nn.relu(y @ params["O"]["w"] + params["O"]["b"])


# ---------------------------------- main -------------------------------------

if __name__ == "__main__":
    B, S, D, H = 2, 8, 32, 4  # batch, seq, input_size, num_head (D % H == 0)

    key = jax.random.PRNGKey(0)
    kp, kq, kk, kv = jax.random.split(key, 4)
    params = init_params(kp, D)

    queries = jax.random.normal(kq, (B, S, D), jnp.float32)
    keys = jax.random.normal(kk, (B, S, D), jnp.float32)
    values = jax.random.normal(kv, (B, S, D), jnp.float32)

    out = multihead_attention(params, queries, keys, values, H)
    out = jax.block_until_ready(out)

    ref = reference(params, queries, keys, values, H)
    # Slightly looser than 1e-5: the kernel reassociates the scale, softmax
    # normalization and the O-projection sum (all f32), each adding ~1 ulp.
    np.testing.assert_allclose(np.asarray(out), np.asarray(ref), rtol=1e-4, atol=1e-5)

    print("KERNEL_OK")
</pallas_src>

<mosaic_0001>
module attributes {stable_mosaic.version = 11 : i64} {
  func.func @fused_mha_kernel(%arg0: i32, %arg1: memref<1x8x32xf32, #tpu.memory_space<vmem>>, %arg2: memref<1x8x32xf32, #tpu.memory_space<vmem>>, %arg3: memref<1x8x32xf32, #tpu.memory_space<vmem>>, %arg4: memref<3x32x32xf32, #tpu.memory_space<vmem>>, %arg5: memref<3x1x32xf32, #tpu.memory_space<vmem>>, %arg6: memref<32x32xf32, #tpu.memory_space<vmem>>, %arg7: memref<1x32xf32, #tpu.memory_space<vmem>>, %arg8: memref<1x8x32xf32, #tpu.memory_space<vmem>>) attributes {dimension_semantics = [#tpu.dimension_semantics<parallel>], iteration_bounds = array<i64: 2>, scalar_prefetch = 0 : i64, scratch_operands = 0 : i64, tpu.core_type = #tpu.core_type<tc>, window_params = [{transform_indices = @transform_0, window_bounds = array<i64: 1, 8, 32>}, {transform_indices = @transform_1, window_bounds = array<i64: 1, 8, 32>}, {transform_indices = @transform_2, window_bounds = array<i64: 1, 8, 32>}, {pipeline_mode = #tpu.pipeline_mode<synchronous>, transform_indices = @transform_3, window_bounds = array<i64: 3, 32, 32>}, {pipeline_mode = #tpu.pipeline_mode<synchronous>, transform_indices = @transform_4, window_bounds = array<i64: 3, 1, 32>}, {pipeline_mode = #tpu.pipeline_mode<synchronous>, transform_indices = @transform_5, window_bounds = array<i64: 32, 32>}, {pipeline_mode = #tpu.pipeline_mode<synchronous>, transform_indices = @transform_6, window_bounds = array<i64: 1, 32>}, {transform_indices = @transform_7, window_bounds = array<i64: 1, 8, 32>}]} {
    %c0 = arith.constant 0 : index
    %c0_0 = arith.constant 0 : index
    %c0_1 = arith.constant 0 : index
    %0 = vector.load %arg1[%c0, %c0_0, %c0_1] : memref<1x8x32xf32, #tpu.memory_space<vmem>>, vector<1x8x32xf32>
    %1 = vector.shape_cast %0 : vector<1x8x32xf32> to vector<8x32xf32>
    %c0_2 = arith.constant 0 : index
    %c0_3 = arith.constant 0 : index
    %c0_4 = arith.constant 0 : index
    %2 = vector.load %arg4[%c0_2, %c0_3, %c0_4] : memref<3x32x32xf32, #tpu.memory_space<vmem>>, vector<1x32x32xf32>
    %3 = vector.shape_cast %2 : vector<1x32x32xf32> to vector<32x32xf32>
    %cst = arith.constant dense<0.000000e+00> : vector<8x32xf32>
    %4 = tpu.matmul %1, %3, %cst {dimension_numbers = #tpu.dot_dimension_numbers<[1], [0], [0], [1], [0, 0, 1, 1], [], []>} : vector<8x32xf32>, vector<32x32xf32>, vector<8x32xf32> -> vector<8x32xf32>
    %c0_5 = arith.constant 0 : index
    %c0_6 = arith.constant 0 : index
    %c0_7 = arith.constant 0 : index
    %5 = vector.load %arg5[%c0_5, %c0_6, %c0_7] : memref<3x1x32xf32, #tpu.memory_space<vmem>>, vector<1x1x32xf32>
    %6 = vector.shape_cast %5 : vector<1x1x32xf32> to vector<1x32xf32>
    %7 = vector.broadcast %6 : vector<1x32xf32> to vector<8x32xf32>
    %8 = arith.addf %4, %7 : vector<8x32xf32>
    %cst_8 = arith.constant 0.000000e+00 : f32
    %9 = vector.broadcast %cst_8 : f32 to vector<8x32xf32>
    %10 = arith.maximumf %8, %9 : vector<8x32xf32>
    %cst_9 = arith.constant 0.353553385 : f32
    %11 = vector.broadcast %cst_9 : f32 to vector<8x32xf32>
    %12 = arith.mulf %10, %11 : vector<8x32xf32>
    %c0_10 = arith.constant 0 : index
    %c0_11 = arith.constant 0 : index
    %c0_12 = arith.constant 0 : index
    %13 = vector.load %arg2[%c0_10, %c0_11, %c0_12] : memref<1x8x32xf32, #tpu.memory_space<vmem>>, vector<1x8x32xf32>
    %14 = vector.shape_cast %13 : vector<1x8x32xf32> to vector<8x32xf32>
    %c1 = arith.constant 1 : index
    %c0_13 = arith.constant 0 : index
    %c0_14 = arith.constant 0 : index
    %15 = vector.load %arg4[%c1, %c0_13, %c0_14] : memref<3x32x32xf32, #tpu.memory_space<vmem>>, vector<1x32x32xf32>
    %16 = vector.shape_cast %15 : vector<1x32x32xf32> to vector<32x32xf32>
    %cst_15 = arith.constant dense<0.000000e+00> : vector<8x32xf32>
    %17 = tpu.matmul %14, %16, %cst_15 {dimension_numbers = #tpu.dot_dimension_numbers<[1], [0], [0], [1], [0, 0, 1, 1], [], []>} : vector<8x32xf32>, vector<32x32xf32>, vector<8x32xf32> -> vector<8x32xf32>
    %c1_16 = arith.constant 1 : index
    %c0_17 = arith.constant 0 : index
    %c0_18 = arith.constant 0 : index
    %18 = vector.load %arg5[%c1_16, %c0_17, %c0_18] : memref<3x1x32xf32, #tpu.memory_space<vmem>>, vector<1x1x32xf32>
    %19 = vector.shape_cast %18 : vector<1x1x32xf32> to vector<1x32xf32>
    %20 = vector.broadcast %19 : vector<1x32xf32> to vector<8x32xf32>
    %21 = arith.addf %17, %20 : vector<8x32xf32>
    %cst_19 = arith.constant 0.000000e+00 : f32
    %22 = vector.broadcast %cst_19 : f32 to vector<8x32xf32>
    %23 = arith.maximumf %21, %22 : vector<8x32xf32>
    %c0_20 = arith.constant 0 : index
    %c0_21 = arith.constant 0 : index
    %c0_22 = arith.constant 0 : index
    %24 = vector.load %arg3[%c0_20, %c0_21, %c0_22] : memref<1x8x32xf32, #tpu.memory_space<vmem>>, vector<1x8x32xf32>
    %25 = vector.shape_cast %24 : vector<1x8x32xf32> to vector<8x32xf32>
    %c2 = arith.constant 2 : index
    %c0_23 = arith.constant 0 : index
    %c0_24 = arith.constant 0 : index
    %26 = vector.load %arg4[%c2, %c0_23, %c0_24] : memref<3x32x32xf32, #tpu.memory_space<vmem>>, vector<1x32x32xf32>
    %27 = vector.shape_cast %26 : vector<1x32x32xf32> to vector<32x32xf32>
    %cst_25 = arith.constant dense<0.000000e+00> : vector<8x32xf32>
    %28 = tpu.matmul %25, %27, %cst_25 {dimension_numbers = #tpu.dot_dimension_numbers<[1], [0], [0], [1], [0, 0, 1, 1], [], []>} : vector<8x32xf32>, vector<32x32xf32>, vector<8x32xf32> -> vector<8x32xf32>
    %c2_26 = arith.constant 2 : index
    %c0_27 = arith.constant 0 : index
    %c0_28 = arith.constant 0 : index
    %29 = vector.load %arg5[%c2_26, %c0_27, %c0_28] : memref<3x1x32xf32, #tpu.memory_space<vmem>>, vector<1x1x32xf32>
    %30 = vector.shape_cast %29 : vector<1x1x32xf32> to vector<1x32xf32>
    %31 = vector.broadcast %30 : vector<1x32xf32> to vector<8x32xf32>
    %32 = arith.addf %28, %31 : vector<8x32xf32>
    %cst_29 = arith.constant 0.000000e+00 : f32
    %33 = vector.broadcast %cst_29 : f32 to vector<8x32xf32>
    %34 = arith.maximumf %32, %33 : vector<8x32xf32>
    %c0_30 = arith.constant 0 : index
    %c0_31 = arith.constant 0 : index
    %35 = vector.load %arg6[%c0_30, %c0_31] : memref<32x32xf32, #tpu.memory_space<vmem>>, vector<32x32xf32>
    %cst_32 = arith.constant 0.000000e+00 : f32
    %36 = vector.broadcast %cst_32 : f32 to vector<8x32xf32>
    %37 = vector.extract_strided_slice %12 {offsets = [0, 0], sizes = [8, 8], strides = [1, 1]} : vector<8x32xf32> to vector<8x8xf32>
    %38 = vector.extract_strided_slice %23 {offsets = [0, 0], sizes = [8, 8], strides = [1, 1]} : vector<8x32xf32> to vector<8x8xf32>
    %39 = vector.extract_strided_slice %34 {offsets = [0, 0], sizes = [8, 8], strides = [1, 1]} : vector<8x32xf32> to vector<8x8xf32>
    %cst_33 = arith.constant dense<0.000000e+00> : vector<8x8xf32>
    %40 = tpu.matmul %37, %38, %cst_33 {dimension_numbers = #tpu.dot_dimension_numbers<[1], [1], [0], [0], [0, 0, 1, 0], [], []>} : vector<8x8xf32>, vector<8x8xf32>, vector<8x8xf32> -> vector<8x8xf32>
    %cst_34 = arith.constant dense<0xFF800000> : vector<8xf32>
    %41 = vector.multi_reduction <maximumf>, %40, %cst_34 [1] : vector<8x8xf32> to vector<8xf32>
    %42 = vector.shape_cast %41 : vector<8xf32> to vector<8x1xf32>
    %43 = vector.broadcast %42 : vector<8x1xf32> to vector<8x8xf32>
    %44 = arith.subf %40, %43 : vector<8x8xf32>
    %45 = math.exp %44 : vector<8x8xf32>
    %cst_35 = arith.constant dense<0.000000e+00> : vector<8xf32>
    %46 = vector.multi_reduction <add>, %45, %cst_35 [1] : vector<8x8xf32> to vector<8xf32>
    %47 = vector.shape_cast %46 : vector<8xf32> to vector<8x1xf32>
    %cst_36 = arith.constant dense<0.000000e+00> : vector<8x8xf32>
    %48 = tpu.matmul %45, %39, %cst_36 {dimension_numbers = #tpu.dot_dimension_numbers<[1], [0], [0], [1], [0, 0, 1, 1], [], []>} : vector<8x8xf32>, vector<8x8xf32>, vector<8x8xf32> -> vector<8x8xf32>
    %49 = tpu.reciprocal %47 : vector<8x1xf32> -> vector<8x1xf32>
    %50 = vector.broadcast %49 : vector<8x1xf32> to vector<8x8xf32>
    %51 = arith.mulf %48, %50 : vector<8x8xf32>
    %52 = vector.extract_strided_slice %35 {offsets = [0, 0], sizes = [8, 32], strides = [1, 1]} : vector<32x32xf32> to vector<8x32xf32>
    %cst_37 = arith.constant dense<0.000000e+00> : vector<8x32xf32>
    %53 = tpu.matmul %51, %52, %cst_37 {dimension_numbers = #tpu.dot_dimension_numbers<[1], [0], [0], [1], [0, 0, 1, 1], [], []>} : vector<8x8xf32>, vector<8x32xf32>, vector<8x32xf32> -> vector<8x32xf32>
    %54 = arith.addf %36, %53 : vector<8x32xf32>
    %55 = vector.extract_strided_slice %12 {offsets = [0, 8], sizes = [8, 8], strides = [1, 1]} : vector<8x32xf32> to vector<8x8xf32>
    %56 = vector.extract_strided_slice %23 {offsets = [0, 8], sizes = [8, 8], strides = [1, 1]} : vector<8x32xf32> to vector<8x8xf32>
    %57 = vector.extract_strided_slice %34 {offsets = [0, 8], sizes = [8, 8], strides = [1, 1]} : vector<8x32xf32> to vector<8x8xf32>
    %cst_38 = arith.constant dense<0.000000e+00> : vector<8x8xf32>
    %58 = tpu.matmul %55, %56, %cst_38 {dimension_numbers = #tpu.dot_dimension_numbers<[1], [1], [0], [0], [0, 0, 1, 0], [], []>} : vector<8x8xf32>, vector<8x8xf32>, vector<8x8xf32> -> vector<8x8xf32>
    %cst_39 = arith.constant dense<0xFF800000> : vector<8xf32>
    %59 = vector.multi_reduction <maximumf>, %58, %cst_39 [1] : vector<8x8xf32> to vector<8xf32>
    %60 = vector.shape_cast %59 : vector<8xf32> to vector<8x1xf32>
    %61 = vector.broadcast %60 : vector<8x1xf32> to vector<8x8xf32>
    %62 = arith.subf %58, %61 : vector<8x8xf32>
    %63 = math.exp %62 : vector<8x8xf32>
    %cst_40 = arith.constant dense<0.000000e+00> : vector<8xf32>
    %64 = vector.multi_reduction <add>, %63, %cst_40 [1] : vector<8x8xf32> to vector<8xf32>
    %65 = vector.shape_cast %64 : vector<8xf32> to vector<8x1xf32>
    %cst_41 = arith.constant dense<0.000000e+00> : vector<8x8xf32>
    %66 = tpu.matmul %63, %57, %cst_41 {dimension_numbers = #tpu.dot_dimension_numbers<[1], [0], [0], [1], [0, 0, 1, 1], [], []>} : vector<8x8xf32>, vector<8x8xf32>, vector<8x8xf32> -> vector<8x8xf32>
    %67 = tpu.reciprocal %65 : vector<8x1xf32> -> vector<8x1xf32>
    %68 = vector.broadcast %67 : vector<8x1xf32> to vector<8x8xf32>
    %69 = arith.mulf %66, %68 : vector<8x8xf32>
    %70 = vector.extract_strided_slice %35 {offsets = [8, 0], sizes = [8, 32], strides = [1, 1]} : vector<32x32xf32> to vector<8x32xf32>
    %cst_42 = arith.constant dense<0.000000e+00> : vector<8x32xf32>
    %71 = tpu.matmul %69, %70, %cst_42 {dimension_numbers = #tpu.dot_dimension_numbers<[1], [0], [0], [1], [0, 0, 1, 1], [], []>} : vector<8x8xf32>, vector<8x32xf32>, vector<8x32xf32> -> vector<8x32xf32>
    %72 = arith.addf %54, %71 : vector<8x32xf32>
    %73 = vector.extract_strided_slice %12 {offsets = [0, 16], sizes = [8, 8], strides = [1, 1]} : vector<8x32xf32> to vector<8x8xf32>
    %74 = vector.extract_strided_slice %23 {offsets = [0, 16], sizes = [8, 8], strides = [1, 1]} : vector<8x32xf32> to vector<8x8xf32>
    %75 = vector.extract_strided_slice %34 {offsets = [0, 16], sizes = [8, 8], strides = [1, 1]} : vector<8x32xf32> to vector<8x8xf32>
    %cst_43 = arith.constant dense<0.000000e+00> : vector<8x8xf32>
    %76 = tpu.matmul %73, %74, %cst_43 {dimension_numbers = #tpu.dot_dimension_numbers<[1], [1], [0], [0], [0, 0, 1, 0], [], []>} : vector<8x8xf32>, vector<8x8xf32>, vector<8x8xf32> -> vector<8x8xf32>
    %cst_44 = arith.constant dense<0xFF800000> : vector<8xf32>
    %77 = vector.multi_reduction <maximumf>, %76, %cst_44 [1] : vector<8x8xf32> to vector<8xf32>
    %78 = vector.shape_cast %77 : vector<8xf32> to vector<8x1xf32>
    %79 = vector.broadcast %78 : vector<8x1xf32> to vector<8x8xf32>
    %80 = arith.subf %76, %79 : vector<8x8xf32>
    %81 = math.exp %80 : vector<8x8xf32>
    %cst_45 = arith.constant dense<0.000000e+00> : vector<8xf32>
    %82 = vector.multi_reduction <add>, %81, %cst_45 [1] : vector<8x8xf32> to vector<8xf32>
    %83 = vector.shape_cast %82 : vector<8xf32> to vector<8x1xf32>
    %cst_46 = arith.constant dense<0.000000e+00> : vector<8x8xf32>
    %84 = tpu.matmul %81, %75, %cst_46 {dimension_numbers = #tpu.dot_dimension_numbers<[1], [0], [0], [1], [0, 0, 1, 1], [], []>} : vector<8x8xf32>, vector<8x8xf32>, vector<8x8xf32> -> vector<8x8xf32>
    %85 = tpu.reciprocal %83 : vector<8x1xf32> -> vector<8x1xf32>
    %86 = vector.broadcast %85 : vector<8x1xf32> to vector<8x8xf32>
    %87 = arith.mulf %84, %86 : vector<8x8xf32>
    %88 = vector.extract_strided_slice %35 {offsets = [16, 0], sizes = [8, 32], strides = [1, 1]} : vector<32x32xf32> to vector<8x32xf32>
    %cst_47 = arith.constant dense<0.000000e+00> : vector<8x32xf32>
    %89 = tpu.matmul %87, %88, %cst_47 {dimension_numbers = #tpu.dot_dimension_numbers<[1], [0], [0], [1], [0, 0, 1, 1], [], []>} : vector<8x8xf32>, vector<8x32xf32>, vector<8x32xf32> -> vector<8x32xf32>
    %90 = arith.addf %72, %89 : vector<8x32xf32>
    %91 = vector.extract_strided_slice %12 {offsets = [0, 24], sizes = [8, 8], strides = [1, 1]} : vector<8x32xf32> to vector<8x8xf32>
    %92 = vector.extract_strided_slice %23 {offsets = [0, 24], sizes = [8, 8], strides = [1, 1]} : vector<8x32xf32> to vector<8x8xf32>
    %93 = vector.extract_strided_slice %34 {offsets = [0, 24], sizes = [8, 8], strides = [1, 1]} : vector<8x32xf32> to vector<8x8xf32>
    %cst_48 = arith.constant dense<0.000000e+00> : vector<8x8xf32>
    %94 = tpu.matmul %91, %92, %cst_48 {dimension_numbers = #tpu.dot_dimension_numbers<[1], [1], [0], [0], [0, 0, 1, 0], [], []>} : vector<8x8xf32>, vector<8x8xf32>, vector<8x8xf32> -> vector<8x8xf32>
    %cst_49 = arith.constant dense<0xFF800000> : vector<8xf32>
    %95 = vector.multi_reduction <maximumf>, %94, %cst_49 [1] : vector<8x8xf32> to vector<8xf32>
    %96 = vector.shape_cast %95 : vector<8xf32> to vector<8x1xf32>
    %97 = vector.broadcast %96 : vector<8x1xf32> to vector<8x8xf32>
    %98 = arith.subf %94, %97 : vector<8x8xf32>
    %99 = math.exp %98 : vector<8x8xf32>
    %cst_50 = arith.constant dense<0.000000e+00> : vector<8xf32>
    %100 = vector.multi_reduction <add>, %99, %cst_50 [1] : vector<8x8xf32> to vector<8xf32>
    %101 = vector.shape_cast %100 : vector<8xf32> to vector<8x1xf32>
    %cst_51 = arith.constant dense<0.000000e+00> : vector<8x8xf32>
    %102 = tpu.matmul %99, %93, %cst_51 {dimension_numbers = #tpu.dot_dimension_numbers<[1], [0], [0], [1], [0, 0, 1, 1], [], []>} : vector<8x8xf32>, vector<8x8xf32>, vector<8x8xf32> -> vector<8x8xf32>
    %103 = tpu.reciprocal %101 : vector<8x1xf32> -> vector<8x1xf32>
    %104 = vector.broadcast %103 : vector<8x1xf32> to vector<8x8xf32>
    %105 = arith.mulf %102, %104 : vector<8x8xf32>
    %106 = vector.extract_strided_slice %35 {offsets = [24, 0], sizes = [8, 32], strides = [1, 1]} : vector<32x32xf32> to vector<8x32xf32>
    %cst_52 = arith.constant dense<0.000000e+00> : vector<8x32xf32>
    %107 = tpu.matmul %105, %106, %cst_52 {dimension_numbers = #tpu.dot_dimension_numbers<[1], [0], [0], [1], [0, 0, 1, 1], [], []>} : vector<8x8xf32>, vector<8x32xf32>, vector<8x32xf32> -> vector<8x32xf32>
    %108 = arith.addf %90, %107 : vector<8x32xf32>
    %c0_53 = arith.constant 0 : index
    %c0_54 = arith.constant 0 : index
    %109 = vector.load %arg7[%c0_53, %c0_54] : memref<1x32xf32, #tpu.memory_space<vmem>>, vector<1x32xf32>
    %110 = vector.broadcast %109 : vector<1x32xf32> to vector<8x32xf32>
    %111 = arith.addf %108, %110 : vector<8x32xf32>
    %cst_55 = arith.constant 0.000000e+00 : f32
    %112 = vector.broadcast %cst_55 : f32 to vector<8x32xf32>
    %113 = arith.maximumf %111, %112 : vector<8x32xf32>
    %c0_56 = arith.constant 0 : index
    %c0_57 = arith.constant 0 : index
    %c0_58 = arith.constant 0 : index
    %114 = vector.load %arg8[%c0_56, %c0_57, %c0_58] : memref<1x8x32xf32, #tpu.memory_space<vmem>>, vector<1x8x32xf32>
    %115 = vector.shape_cast %114 : vector<1x8x32xf32> to vector<8x32xf32>
    %116 = vector.shape_cast %113 : vector<8x32xf32> to vector<1x8x32xf32>
    tpu.vector_store %arg8[%c0_56, %c0_57, %c0_58], %116 {strides = array<i32>} : memref<1x8x32xf32, #tpu.memory_space<vmem>>, vector<1x8x32xf32>,
    return
  }
  func.func @transform_0(%arg0: i32) -> (i32, i32, i32) {
    %c0_i32 = arith.constant 0 : i32
    %c0_i32_0 = arith.constant 0 : i32
    %c0_i32_1 = arith.constant 0 : i32
    return %arg0, %c0_i32, %c0_i32_0 : i32, i32, i32
  }
  func.func @transform_1(%arg0: i32) -> (i32, i32, i32) {
    %c0_i32 = arith.constant 0 : i32
    %c0_i32_0 = arith.constant 0 : i32
    %c0_i32_1 = arith.constant 0 : i32
    return %arg0, %c0_i32, %c0_i32_0 : i32, i32, i32
  }
  func.func @transform_2(%arg0: i32) -> (i32, i32, i32) {
    %c0_i32 = arith.constant 0 : i32
    %c0_i32_0 = arith.constant 0 : i32
    %c0_i32_1 = arith.constant 0 : i32
    return %arg0, %c0_i32, %c0_i32_0 : i32, i32, i32
  }
  func.func @transform_3(%arg0: i32) -> (i32, i32, i32) {
    %c0_i32 = arith.constant 0 : i32
    %c0_i32_0 = arith.constant 0 : i32
    %c0_i32_1 = arith.constant 0 : i32
    %c0_i32_2 = arith.constant 0 : i32
    return %c0_i32, %c0_i32_0, %c0_i32_1 : i32, i32, i32
  }
  func.func @transform_4(%arg0: i32) -> (i32, i32, i32) {
    %c0_i32 = arith.constant 0 : i32
    %c0_i32_0 = arith.constant 0 : i32
    %c0_i32_1 = arith.constant 0 : i32
    %c0_i32_2 = arith.constant 0 : i32
    return %c0_i32, %c0_i32_0, %c0_i32_1 : i32, i32, i32
  }
  func.func @transform_5(%arg0: i32) -> (i32, i32) {
    %c0_i32 = arith.constant 0 : i32
    %c0_i32_0 = arith.constant 0 : i32
    %c0_i32_1 = arith.constant 0 : i32
    return %c0_i32, %c0_i32_0 : i32, i32
  }
  func.func @transform_6(%arg0: i32) -> (i32, i32) {
    %c0_i32 = arith.constant 0 : i32
    %c0_i32_0 = arith.constant 0 : i32
    %c0_i32_1 = arith.constant 0 : i32
    return %c0_i32, %c0_i32_0 : i32, i32
  }
  func.func @transform_7(%arg0: i32) -> (i32, i32, i32) {
    %c0_i32 = arith.constant 0 : i32
    %c0_i32_0 = arith.constant 0 : i32
    %c0_i32_1 = arith.constant 0 : i32
    return %arg0, %c0_i32, %c0_i32_0 : i32, i32, i32
  }
}

</mosaic_0001>

<bundles_post_ra>
// kernel: tpu_custom_call.1
= control target key start
LH: loop header
LB: loop body
LE: loop exit
PB: predicated region body
PF: predicated region fallthrough
CT: control target
= control target key end

     0   :  { %s2753_s0 = inlined_call_operand.hbm [shape: f32[2,8,32], index: 0, kind: input, shape index: {}]   ;;  %s2754_s1 = inlined_call_operand.hbm [shape: f32[2,8,32], index: 1, kind: input, shape index: {}]   ;;  %s2755_s2 = inlined_call_operand.hbm [shape: f32[2,8,32], index: 2, kind: input, shape index: {}]   ;;  %s2756_s3 = inlined_call_operand.hbm [shape: f32[3,32,32], index: 3, kind: input, shape index: {}]   ;;  %s2757_s4 = inlined_call_operand.vmem [shape: f32[3,1,32], index: 4, kind: input, shape index: {}]   ;;  %s2758_s5 = inlined_call_operand.hbm [shape: f32[32,32], index: 5, kind: input, shape index: {}]   ;;  %s2759_s6 = inlined_call_operand.vmem [shape: f32[1,32], index: 6, kind: input, shape index: {}]   ;;  %s2760_s7 = inlined_call_operand.hbm [shape: f32[2,8,32], index: 7, kind: output, shape index: {}]  }
   0x1   :  { %2778 = sst [smem:[#allocation19_spill]] %s2754_s1 }
   0x2   :  { %2779 = sst [smem:[#allocation20_spill]] %s2756_s3 }
   0x3   :  { %12 = vsyncpa [#allocation3], 0 }
   0x4   :  { %14 = vsyncpa [#allocation3 + $0x1], 0 }
   0x5   :  { %15 = vsyncpa [#allocation6], 0 }
   0x6   :  { %17 = vsyncpa [#allocation6 + $0x1], 0 }
   0x7   :  { %18 = vsyncpa [#allocation9], 0 }
   0x8   :  { %19 = vsyncpa [#allocation4], 0 }
   0x9   :  { %21 = vsyncpa [#allocation4 + $0x1], 0  ;;  %s2343_s24 = smov 0   ;;  %s2345_s25 = smov 0  }
   0xa   :  { %s2347_s26 = smov 0   ;;  %s2349_s27 = smov 0  }
   0xb LB: > { %2780 = sst [smem:[#allocation16_spill]] %s2287_s27  ;;  %s2364_s28 = sadd.s32 4294967295, %s2287_s27   ;;  %s2287_s27 = sphi %s2349_s27, %s2810_s27   ;;  %s2283_s26 = sphi %s2347_s26, %s2814_s26   ;;  %s2279_s25 = sphi %s2345_s25, %s2813_s25   ;;  %s2275_s24 = sphi %s2343_s24, %s2812_s24  }
   0xc   : > { %s1769_s29 = sadd.s32 4294967294, %s2287_s27   ;;  %p47_p0 = scmp.ne.s32.totalorder %s2279_s25, %s2275_s24 }
   0xd   : > { %p2761_p1 = scmp.eq.s32.totalorder %s2364_s28, 0  ;;  %p213_p3 = scmp.eq.s32.totalorder %s1769_s29, 1 }
   0xe   : > { %p1770_p5 = scmp.ge.s32.totalorder %s2287_s27, 1  ;;  %p220_p7 = scmp.lt.s32.totalorder %s2287_s27, 3 }
   0xf   : > { %p2373_p4 = por %p2761_p1, %p47_p0  ;;  %p2378_p6 = por %p213_p3, %p47_p0 }
  0x10   : > { %p2383_p8 = pnand %p1770_p5, %p220_p7  ;;  %s2289_s10 = smov [#allocation8]  }
  0x11   : > { %s2781_s30 = scalar_select %p2373_p4, 1, 0 }
  0x12   : > { %s2782_s8 = scalar_select %p2378_p6, 1, 0 }
  0x13   : > { %s2783_s9 = scalar_select %p2383_p8, 1, 0 }
  0x14   : > { %s232_s11 = sshll.u32 %s2289_s10, 4  ;;  %p1982_p9 = pneg %p2383_p8  ;;  %s2387_s11 = int_to_ptr.vmem [resolvable:$true] %s232_s11 }
  0x15   : > { %s2399_s13 = sadd.s32 1, %s2287_s27   ;;  %s34_s14 = sadd.s32 1, %s2283_s26 }
  0x16   : > { %p2394_p11 = pnand %p1982_p9, %p2761_p1  ;;  %2785 = sst [smem:[#allocation17_spill]] %s2399_s13 }
  0x17   : > { %s31_s15 = ssub.s32 %s2287_s27, %s2399_s13  ;;  %s2786_s3 = sld [smem:[#allocation20_spill]] }
  0x18   : > { %s2784_s12 = scalar_select %p2394_p11, 1, 0 }
  0x19   : > { %p2767_p13 = pneg %p2394_p11 }
  0x1d   : > { %s2067_s18 = scalar_lea.hbm %s2786_s3, 1536 }
  0x1e   : > { %p2068_p12 = scmp.ne.s32.totalorder %s2786_s3, %s2067_s18  ;;  %p2074_p5 = scmp.lt.u32.totalorder %s2067_s18, %s2786_s3 }
  0x20   : > { %p2070_p0 = pnand %p2767_p13, %p2068_p12 }
  0x22   : > { %p2071_p3 = pneg %p2070_p0 }
  0x24   : > { %p2076_p7 = pnand %p2074_p5, %p2071_p3 }
  0x26   : > { %2079 = shalt.err (!%p2076_p7)
}
  0x27   : > { %s2080_s23 = scalar_lea.vmem %s2387_s11, 1536  ;;  %p2088_p2 = scmp.lt.s32.totalorder %s2387_s11, %s2387_s11 }
  0x28   : > { %p2081_p9 = scmp.ne.s32.totalorder %s2387_s11, %s2080_s23  ;;  %p2089_p12 = scmp.lt.s32.totalorder %s2080_s23, %s2080_s23 }
  0x2a   : > { %p2083_p10 = pnand %p2081_p9, %p2767_p13  ;;  %p2090_p0 = por %p2089_p12, %p2088_p2 }
  0x2c   : > { %p2084_p1 = pneg %p2083_p10 }
  0x2e   : > { %p2091_p6 = pnand %p2090_p0, %p2084_p1 }
  0x30   : > { %2094 = shalt.err (!%p2091_p6)
}
  0x31   : > { %s2762_s29 = smov 128   ;;  %s2764_s10 = smov 8  }
  0x32   : > { %1985 = dma.hbm_to_vmem [thread:$0]  (!%p2394_p11), %s2786_s3, 1536, %s2387_s11, [#allocation9], %s2762_s29, %s2762_s29, %s2764_s10  }
  0x33   : > { %p32_p1 = scmp.eq.s32.totalorder %s31_s15, 0  ;;  %p41_p2 = scmp.ne.s32.totalorder %s2283_s26, %s2279_s25 }
  0x34   : > { %p42_p6 = scmp.eq.s32.totalorder %s2287_s27, 0  ;;  %p2005_p10 = scmp.lt.s32.totalorder %s2287_s27, 2 }
  0x35   : > { %s2439_s18 = scalar_select %p32_p1, %s2283_s26, %s34_s14  }
  0x36   : > { %p43_p3 = por %p42_p6, %p41_p2  ;;  %p2788_p5 = scmp.eq.s32.totalorder %s2364_s28, 1 }
  0x37   : > { %2787 = sst [smem:[#allocation18_spill]] %s2439_s18  ;;  %s2763_s20 = sand.u32 1, %s2283_s26  }
  0x38   : > { %p2443_p7 = por %p2788_p5, %p41_p2  ;;  %s2449_s21 = sshll.u32 %s2287_s27, 7 }
  0x39   : > { %s2453_s22 = sshll.u32 %s2763_s20, 3  ;;  %p2455_p9 = pnand %p2005_p10, %p43_p3 }
  0x3a   : > { %s2789_s19 = scalar_select %p2443_p7, 1, 0 }
  0x3b   : > { %s2790_s11 = scalar_select %p2455_p9, 1, 0 }
  0x3c   : > { %s283_s14 = sand.u32 1, %s2287_s27   ;;  %s2791_s1 = sld [smem:[#allocation19_spill]] }
  0x3d   : > { %s287_s17 = scalar_lea.vmem [#allocation5], %s2453_s22  ;;  %s2469_s20 = scalar_lea.sflag [#allocation6], %s283_s14 }
  0x3e   : > { %s294_s29 = sshll.u32 %s287_s17, 4  ;;  %p2475_p0 = pneg %p2455_p9  ;;  %s2467_s29 = int_to_ptr.vmem [resolvable:$true] %s294_s29 }
  0x40   : > { %s2792_s3 = scalar_select %p2475_p0, 1, 0 }
  0x42   : > { %s2464_s16 = scalar_lea.hbm %s2791_s1, %s2449_s21  ;;  %s2100_s18 = scalar_lea.hbm %s2791_s1, 256 }
  0x43   : > { %s2095_s10 = scalar_lea.hbm %s2464_s16, 128  ;;  %p2101_p6 = scmp.lt.u32.totalorder %s2464_s16, %s2791_s1 }
  0x44   : > { %p2096_p12 = scmp.ne.s32.totalorder %s2464_s16, %s2095_s10  ;;  %p2102_p10 = scmp.lt.u32.totalorder %s2100_s18, %s2095_s10 }
  0x45   : > { %p2104_p5 = scmp.lt.u32.totalorder %s2095_s10, %s2464_s16 }
  0x46   : > { %p2098_p1 = pnand %p2475_p0, %p2096_p12  ;;  %p2103_p3 = por %p2102_p10, %p2101_p6 }
  0x48   : > { %p2099_p2 = pneg %p2098_p1  ;;  %p2105_p13 = por %p2104_p5, %p2103_p3 }
  0x4a   : > { %p2106_p7 = pnand %p2105_p13, %p2099_p2 }
  0x4c   : > { %2109 = shalt.err (!%p2106_p7)
}
  0x4d   : > { %s2110_s14 = scalar_lea.vmem %s2467_s29, 128  ;;  %s2292_s15 = smov [#allocation5]  }
  0x4e   : > { %p2111_p12 = scmp.ne.s32.totalorder %s2467_s29, %s2110_s14  ;;  %s2115_s23 = sshll.u32 %s2292_s15, 4  ;;  %s2116_s23 = int_to_ptr.vmem [resolvable:$false] %s2115_s23 }
  0x4f   : > { %s2117_s13 = scalar_lea.vmem %s2116_s23, 256  ;;  %p2118_p8 = scmp.lt.s32.totalorder %s2467_s29, %s2116_s23 }
  0x50   : > { %p2113_p1 = pnand %p2111_p12, %p2475_p0  ;;  %p2119_p11 = scmp.lt.s32.totalorder %s2117_s13, %s2110_s14 }
  0x52   : > { %p2114_p4 = pneg %p2113_p1  ;;  %p2120_p6 = por %p2119_p11, %p2118_p8 }
  0x54   : > { %p2121_p10 = pnand %p2120_p6, %p2114_p4 }
  0x56   : > { %2124 = shalt.err (!%p2121_p10)
}
  0x57   : > { %1995 = dma.hbm_to_vmem [thread:$0]  (!%p2455_p9), %s2464_s16, 128, %s2467_s29, %s2469_s20  }
  0x58   : > { %s2293_s10 = smov [#allocation10]   ;;  %s2125_s15 = scalar_lea.hbm %s2758_s5, 512 }
  0x59   : > { %s248_s18 = sshll.u32 %s2293_s10, 4  ;;  %p2126_p8 = scmp.ne.s32.totalorder %s2758_s5, %s2125_s15  ;;  %s249_s18 = int_to_ptr.vmem [resolvable:$true] %s248_s18 }
  0x5a   : > { %p2793_p4 = scmp.ne.s32.totalorder %s2784_s12, 0  ;;  %p2132_p2 = scmp.lt.u32.totalorder %s2125_s15, %s2758_s5 }
  0x5c   : > { %p2794_p11 = pneg %p2793_p4 }
  0x5e   : > { %p2128_p13 = pnand %p2126_p8, %p2794_p11 }
  0x60   : > { %p2129_p7 = pneg %p2128_p13 }
  0x62   : > { %p2134_p3 = pnand %p2132_p2, %p2129_p7 }
  0x64   : > { %2137 = shalt.err (!%p2134_p3)
}
  0x65   : > { %s2138_s29 = scalar_lea.vmem %s249_s18, 512  ;;  %p2795_p12 = pmov %p2794_p11 }
  0x66   : > { %p2139_p5 = scmp.ne.s32.totalorder %s249_s18, %s2138_s29  ;;  %p2146_p10 = scmp.lt.s32.totalorder %s249_s18, %s249_s18 }
  0x67   : > { %p2147_p9 = scmp.lt.s32.totalorder %s2138_s29, %s2138_s29 }
  0x68   : > { %p2141_p1 = pnand %p2139_p5, %p2795_p12 }
  0x69   : > { %p2148_p0 = por %p2147_p9, %p2146_p10 }
  0x6a   : > { %p2142_p6 = pneg %p2141_p1 }
  0x6c   : > { %p2149_p8 = pnand %p2148_p0, %p2142_p6 }
  0x6e   : > { %2152 = shalt.err (!%p2149_p8)
}
  0x6f   : > { %s2796_s1 = smov 8   ;;  %s2797_s27 = smov 128  }
  0x70   : > { %1988 = dma.hbm_to_vmem [thread:$0]  (!%p2793_p4), %s2758_s5, 512, %s249_s18, [#allocation9], %s2797_s27, %s2797_s27, %s2796_s1  }
  0x71   : > { %s2526_s23 = scalar_lea.hbm %s2753_s0, %s2449_s21  ;;  %s269_s12 = scalar_lea.vmem [#allocation2], %s2453_s22 }
  0x72   : > { %s276_s14 = sshll.u32 %s269_s12, 4  ;;  %s2798_s13 = sand.u32 1, %s2283_s26   ;;  %s277_s14 = int_to_ptr.vmem [resolvable:$true] %s276_s14 }
  0x73   : > { %s266_s29 = scalar_lea.sflag [#allocation3], %s2798_s13  ;;  %s2153_s16 = scalar_lea.hbm %s2526_s23, 128 }
  0x74   : > { %p2154_p9 = scmp.ne.s32.totalorder %s2526_s23, %s2153_s16  ;;  %p2799_p0 = scmp.ne.s32.totalorder %s2792_s3, 0 }
  0x75   : > { %s2158_s27 = scalar_lea.hbm %s2753_s0, 256  ;;  %p2159_p4 = scmp.lt.u32.totalorder %s2526_s23, %s2753_s0 }
  0x76   : > { %p2156_p11 = pnand %p2154_p9, %p2799_p0  ;;  %p2160_p7 = scmp.lt.u32.totalorder %s2158_s27, %s2153_s16 }
  0x77   : > { %p2162_p3 = scmp.lt.u32.totalorder %s2153_s16, %s2526_s23 }
  0x78   : > { %p2157_p13 = pneg %p2156_p11  ;;  %p2161_p2 = por %p2160_p7, %p2159_p4 }
  0x7a   : > { %p2163_p5 = por %p2162_p3, %p2161_p2 }
  0x7c   : > { %p2164_p12 = pnand %p2163_p5, %p2157_p13 }
  0x7e   : > { %2167 = shalt.err (!%p2164_p12)
}
  0x7f   : > { %s2168_s15 = scalar_lea.vmem %s277_s14, 128  ;;  %s2294_s12 = smov [#allocation2]  }
  0x80   : > { %p2169_p1 = scmp.ne.s32.totalorder %s277_s14, %s2168_s15  ;;  %s2173_s13 = sshll.u32 %s2294_s12, 4  ;;  %s2174_s13 = int_to_ptr.vmem [resolvable:$false] %s2173_s13 }
  0x81   : > { %s2175_s18 = scalar_lea.vmem %s2174_s13, 256  ;;  %p2176_p8 = scmp.lt.s32.totalorder %s277_s14, %s2174_s13 }
  0x82   : > { %p2171_p6 = pnand %p2169_p1, %p2799_p0  ;;  %p2177_p9 = scmp.lt.s32.totalorder %s2175_s18, %s2168_s15 }
  0x84   : > { %p2172_p10 = pneg %p2171_p6  ;;  %p2178_p11 = por %p2177_p9, %p2176_p8 }
  0x86   : > { %p2179_p4 = pnand %p2178_p11, %p2172_p10 }
  0x88   : > { %2182 = shalt.err (!%p2179_p4)
}
  0x89   : > { %p2800_p7 = scmp.ne.s32.totalorder %s2790_s11, 0  ;;  %s2552_s27 = scalar_lea.hbm %s2755_s2, %s2449_s21 }
  0x8a   : > { %s305_s10 = scalar_lea.vmem [#allocation7], %s2453_s22  ;;  %s2183_s15 = scalar_lea.hbm %s2552_s27, 128 }
  0x8b   : > { %1992 = dma.hbm_to_vmem [thread:$0]  (!%p2800_p7), %s2526_s23, 128, %s277_s14, %s266_s29  }
  0x8c   : > { %s312_s17 = sshll.u32 %s305_s10, 4  ;;  %p2184_p13 = scmp.ne.s32.totalorder %s2552_s27, %s2183_s15  ;;  %s313_s17 = int_to_ptr.vmem [resolvable:$true] %s312_s17 }
  0x8d   : > { %s2188_s23 = scalar_lea.hbm %s2755_s2, 256  ;;  %p2189_p5 = scmp.lt.u32.totalorder %s2552_s27, %s2755_s2 }
  0x8e   : > { %p2186_p2 = pnand %p2184_p13, %p2799_p0  ;;  %p2190_p12 = scmp.lt.u32.totalorder %s2188_s23, %s2183_s15 }
  0x8f   : > { %p2192_p6 = scmp.lt.u32.totalorder %s2183_s15, %s2552_s27 }
  0x90   : > { %p2187_p3 = pneg %p2186_p2  ;;  %p2191_p1 = por %p2190_p12, %p2189_p5 }
  0x92   : > { %p2193_p10 = por %p2192_p6, %p2191_p1 }
  0x94   : > { %p2194_p8 = pnand %p2193_p10, %p2187_p3 }
  0x96   : > { %2197 = shalt.err (!%p2194_p8)
}
  0x97   : > { %s2198_s21 = scalar_lea.vmem %s313_s17, 128  ;;  %s2295_s22 = smov [#allocation7]  }
  0x98   : > { %p2199_p9 = scmp.ne.s32.totalorder %s313_s17, %s2198_s21  ;;  %s2203_s18 = sshll.u32 %s2295_s22, 4  ;;  %s2204_s18 = int_to_ptr.vmem [resolvable:$false] %s2203_s18 }
  0x99   : > { %s2205_s16 = scalar_lea.vmem %s2204_s18, 256  ;;  %p2206_p13 = scmp.lt.s32.totalorder %s313_s17, %s2204_s18 }
  0x9a   : > { %p2201_p11 = pnand %p2199_p9, %p2799_p0  ;;  %p2207_p2 = scmp.lt.s32.totalorder %s2205_s16, %s2198_s21 }
  0x9c   : > { %p2202_p4 = pneg %p2201_p11  ;;  %p2208_p7 = por %p2207_p2, %p2206_p13 }
  0x9e   : > { %p2209_p5 = pnand %p2208_p7, %p2202_p4 }
  0xa0   : > { %2212 = shalt.err (!%p2209_p5)
}
  0xa1   : > { %p2801_p12 = scmp.ne.s32.totalorder %s2790_s11, 0  ;;  %p2802_p3 = scmp.ne.s32.totalorder %s2783_s9, 0 }
  0xa2   : > { %s2576_s3 = sand.u32 (!%p2802_p3), 1, %s2279_s25   ;;  %p2803_p0 = scmp.ne.s32.totalorder (!%p2802_p3), %s2781_s30, 0 }
  0xa3   : > { %1998 = dma.hbm_to_vmem [thread:$0]  (!%p2801_p12), %s2552_s27, 128, %s313_s17, %s2469_s20  }
  0xa4   : > { %321 = sbr.rel (%p2802_p3) target bundleno = 2302 (0x8fe), region = 48  ;;  %s2579_s1 = sshll.u32 (!%p2802_p3), %s2576_s3, 3 }
  0xa5   : > { %s324_s10 = scalar_lea.sflag (!%p2802_p3), [#allocation3], %s2576_s3  ;;  %s327_s15 = scalar_lea.vmem (!%p2802_p3), [#allocation2], %s2579_s1 }
  0xab   : > { %2258 = dma.done.wait (%p2803_p0), %s324_s10, 128  }
  0xac   : > { %2260 = vsyncadd (%p2803_p0), %s324_s10, 4294967168  ;;  %s332_s9 = sand.u32 1, %s2364_s28   ;;  %s336_s11 = scalar_lea.vmem [#allocation5], %s2579_s1 }
  0xad   : > { %s333_s20 = scalar_lea.sflag [#allocation6], %s332_s9 }
  0xae   : > { %2262 = dma.done.wait (%p2803_p0), %s333_s20, 256  }
  0xaf   : > { %2264 = vsyncadd (%p2803_p0), %s333_s20, 4294967040  ;;  %s345_s27 = scalar_lea.vmem [#allocation7], %s2579_s1  ;;  %p2804_p7 = scmp.eq.s32.totalorder %s2364_s28, 0 }
  0xb1   : > { %2266 = dma.done.wait (%p2804_p7), [#allocation9], 2048   ;;  %p2805_p1 = pmov %p2804_p7 }
  0xb2   : > { %v2296_v0 = vmov 0.0|0.0   ;;  %vm2297_vm0 = vmmov 0   ;;  %v2298_v1 = vmov 0.0   ;;  %v395_v2 = vld [vmem:[#allocation8] sm:$0xff]  ;;  %v396_v3 = vld [vmem:[#allocation8 + $0x8] sm:$0xff]  ;;  %v397_v7 = vld [vmem:[#allocation8 + $0x10] sm:$0xff] }
  0xb3   : > { %2268 = vsyncadd (%p2805_p1), [#allocation9], 4294965248  ;;  %1948 = vmatprep.subr.bf16.mxu0 %v2296_v0  ;;  %1954 = vmatprep.subr.bf16.mxu1 %v2296_v0  ;;  %v484_v4 = vld [vmem:[#allocation8 + $0x20] sm:$0xff]  ;;  %v1949_v5 = vpack.c.bf16 %v396_v3, %v395_v2  ;;  %v485_v6 = vld [vmem:[#allocation8 + $0x28] sm:$0xff]  ;;  %vm406_vm1 = vcmask 261120   ;;  %vm662_vm2 = vcmask 64512  }
  0xb4   : > { %1874 = vmatprep.mubr.msk.f32.mxu1 %vm2297_vm0, %v2298_v1  ;;  %1863 = vmatprep.mubr.msk.f32.mxu0 %vm2297_vm0, %v2298_v1  ;;  %v398_v8 = vld [vmem:[#allocation8 + $0x18] sm:$0xff]  ;;  %v1955_v9 = vpack.c.bf16 %v485_v6, %v484_v4  ;;  %v486_v10 = vld [vmem:[#allocation8 + $0x30] sm:$0xff]  ;;  %v572_v14 = vld [vmem:[#allocation8 + $0x40] sm:$0xff]  ;;  %s2299_s23 = smov 120   ;;  %s2300_s21 = smov 112  }
  0xb5   : > { %v487_v11 = vld [vmem:[#allocation8 + $0x38] sm:$0xff]  ;;  %1950 = vmatpush3.bf16.msra.mxu0 %v1949_v5  ;;  %v1952_v12 = vpack.c.bf16 %v398_v8, %v397_v7  ;;  %v573_v15 = vld [vmem:[#allocation8 + $0x48] sm:$0xff]  ;;  %v574_v19 = vld [vmem:[#allocation8 + $0x50] sm:$0xff]  ;;  %s2301_s22 = smov 104   ;;  %s1813_s10 = sshll.u32 %s2364_s28, 7 }
  0xb6   : > { %1956 = vmatpush3.bf16.msra.mxu1 %v1955_v9  ;;  %1951 = vmatprep.subr.bf16.mxu0 %v2296_v0  ;;  %v1958_v13 = vpack.c.bf16 %v487_v11, %v486_v10  ;;  %v394_v16 = vld [vmem:[%s327_s15] sm:$0xff]  ;;  %v1961_v17 = vpack.c.bf16 %v573_v15, %v572_v14  ;;  %v482_v18 = vld [vmem:[%s336_s11] sm:$0xff]  ;;  %s393_s15 = scalar_lea.vmem [#allocation11], %s2579_s1  ;;  %s1624_s30 = scalar_lea.sflag [#allocation4], %s2576_s3 }
  0xb7   : > { %1957 = vmatprep.subr.bf16.mxu1 %v2296_v0  ;;  %v575_v20 = vld [vmem:[#allocation8 + $0x58] sm:$0xff]  ;;  %v1787_v23 = vld [vmem:[%s2757_s4] ss:$0 sm:$0xff]  ;;  %v1790_v24 = vld [vmem:[%s2757_s4 + $0x1] ss:$0 sm:$0xff]  ;;  %s1637_s9 = sshll.u32 %s393_s15, 4  ;;  %s2710_s9 = int_to_ptr.vmem [resolvable:$true] %s1637_s9 }
  0xb8   : > { %v1964_v21 = vpack.c.bf16 %v575_v20, %v574_v19  ;;  %v570_v22 = vld [vmem:[%s345_s27] sm:$0xff]  ;;  %v658_v56 = vld [vmem:[#allocation10] sm:$0xff]  ;;  %v659_v59 = vld [vmem:[#allocation10 + $0x8] sm:$0xff]  ;;  %s2708_s27 = scalar_lea.hbm %s2760_s7, %s1813_s10  ;;  %s2213_s17 = scalar_lea.vmem %s2710_s9, 128 }
  0xb9   : > { %1953 = vmatpush3.bf16.msra.mxu0 %v1952_v12  ;;  %v1793_v34 = vld [vmem:[%s2757_s4 + $0x2] ss:$0 sm:$0xff]  ;;  %p2214_p6 = scmp.ne.s32.totalorder %s2710_s9, %s2213_s17  ;;  %p2806_p10 = scmp.ne.s32.totalorder %s2789_s19, 0 }
  0xba   : > { %1959 = vmatpush3.bf16.msra.mxu1 %v1958_v13  ;;  %1960 = vmatprep.subr.bf16.mxu0 %v2296_v0  ;;  %s2302_s28 = smov [#allocation11]  }
  0xbb   : > { %1888 = vmatprep.subr.mxu1 %v2298_v1  ;;  %p2215_p8 = pnand %p2214_p6, %p2806_p10  ;;  %s2217_s1 = sshll.u32 %s2302_s28, 4  ;;  %s2218_s1 = int_to_ptr.vmem [resolvable:$false] %s2217_s1 }
  0xbc   : > { %1864 = vmatmul.mubr.msk.f32.vlgmr.msra.gmra.mrb[0].mxu0 %vm406_vm1, %v394_v16  ;;  %s2219_s12 = scalar_lea.vmem %s2218_s1, 256  ;;  %p2220_p11 = scmp.lt.s32.totalorder %s2710_s9, %s2218_s1 }
  0xbd   : > { %1875 = vmatmul.mubr.msk.f32.vlgmr.msra.gmra.mrb[0].mxu1 %vm406_vm1, %v482_v18  ;;  %1962 = vmatpush3.bf16.msra.mxu0 %v1961_v17  ;;  %p2216_p9 = pneg %p2215_p8  ;;  %p2221_p4 = scmp.lt.s32.totalorder %s2219_s12, %s2213_s17 }
  0xbe   : > { %1963 = vmatprep.subr.bf16.mxu0 %v2296_v0  ;;  %1885 = vmatprep.mubr.msk.f32.mxu0 %vm2297_vm0, %v2298_v1 }
  0xbf   : > { %1890 = vmatprep.mubr.msk.f32.mxu1 %vm2297_vm0, %v2298_v1  ;;  %p2222_p13 = por %p2221_p4, %p2220_p11 }
  0xc1   : > { %1965 = vmatpush3.bf16.msra.mxu0 %v1964_v21  ;;  %p2223_p2 = pnand %p2222_p13, %p2216_p9 }
  0xc2   : > { %1898 = vmatprep.subr.mxu0 %v2298_v1 }
  0xc4   : > { %1886 = vmatmul.mubr.msk.f32.vlgmr.msra.gmra.mrb[2].mxu0 %vm406_vm1, %v570_v22 }
  0xc5   : > { %1900 = vmatprep.mubr.msk.f32.mxu0 %vm2297_vm0, %v2298_v1 }
 0x18f   : > { %v476_v25 = vpop.f32.mrb[0].mxu0 }
 0x190   : > { %v565_v26 = vpop.f32.mrb[0].mxu1  ;;  %v477_v27 = vadd.f32 %v1787_v23, %v476_v25  ;;  %v1865_v28 = vpop.f32.mrb[1].mxu0  ;;  %v660_v25 = vld [vmem:[#allocation10 + $0x10] sm:$0xff] }
 0x191   : > { %v566_v29 = vadd.f32 %v1790_v24, %v565_v26  ;;  %v1876_v30 = vpop.f32.mrb[1].mxu1 }
 0x192   : > { %v480_v31 = vmax.f32 %v477_v27, 0.0 }
 0x193   : > { %v2625_v32 = vmax.f32 %v566_v29, 0.0 }
 0x194   : > { %v481_v33 = vmul.f32 0.35355338, %v480_v31 }
 0x195   : > { %825 = vrot.lane.b32.xlu0 %v2625_v32, %s2299_s23  ;;  %1889 = vmatpush3.xpose.msk.msra.mxu1 %vm662_vm2, %v2625_v32 }
 0x196   : > { %1893 = vmatprep.subr.mxu1 %v2298_v1 }
 0x197   : > { %v653_v35 = vpop.f32.mrb[2].mxu0 }
 0x198   : > { %v654_v36 = vadd.f32 %v1793_v34, %v653_v35  ;;  %1891 = vmatmul.mubr.msk.f32.vlgmr.msra.gmra.mrb[2].mxu1 %vm662_vm2, %v481_v33  ;;  %v1887_v37 = vpop.f32.mrb[3].mxu0 }
 0x199   : > { %823 = vrot.lane.b32.xlu0 %v481_v33, %s2299_s23  ;;  %1895 = vmatprep.mubr.msk.f32.mxu1 %vm2297_vm0, %v2298_v1 }
 0x19a   : > { %v2637_v38 = vmax.f32 %v654_v36, 0.0 }
 0x19c   : > { %1894 = vmatpush3.msra.mxu1 %v2637_v38 }
 0x19d   : > { %911 = vrot.lane.b32.xlu0 %v2637_v38, %s2299_s23  ;;  %1903 = vmatprep.subr.mxu1 %v2298_v1 }
 0x1a1   : > { %1137 = vrot.lane.b32.xlu0 %v2625_v32, %s2300_s21 }
 0x207   : > { %v826_v39 = vpop.permute.xlu0 %825 }
 0x208   : > { %1899 = vmatpush3.xpose.msk.msra.mxu0 %vm662_vm2, %v826_v39 }
 0x209   : > { %1908 = vmatprep.subr.mxu0 %v2298_v1 }
 0x20b   : > { %v824_v40 = vpop.permute.xlu0 %823 }
 0x20c   : > { %1901 = vmatmul.mubr.msk.f32.vlgmr.msra.gmra.mrb[4].mxu0 %vm662_vm2, %v824_v40  ;;  %v661_v40 = vld [vmem:[#allocation10 + $0x18] sm:$0xff] }
 0x20d   : > { %1910 = vmatprep.mubr.msk.f32.mxu0 %vm2297_vm0, %v2298_v1  ;;  %1909 = vmatpush3.msra.mxu0 %v659_v59 }
 0x20e   : > { %1918 = vmatprep.subr.mxu0 %v2298_v1 }
 0x20f   : > { %v912_v51 = vpop.permute.xlu0 %911 }
 0x213   : > { %v1138_v60 = vpop.permute.xlu0 %1137 }
 0x26b   : > { %v735_v41 = vpop.f32.mrb[2].mxu1 }
 0x26c   : > { %v1892_v42 = vpop.f32.mrb[3].mxu1  ;;  %v739_v43 = vsel %vm662_vm2, %v735_v41, -inf }
 0x26d   : > { %740 = vmax.xlane.f32.xlu1 %v739_v43 }
 0x2df   : > { %v897_v44 = vpop.f32.mrb[4].mxu0 }
 0x2e0   : > { %v1902_v45 = vpop.f32.mrb[5].mxu0  ;;  %v901_v46 = vsel %vm662_vm2, %v897_v44, -inf }
 0x2e1   : > { %902 = vmax.xlane.f32.xlu1 %v901_v46 }
 0x2fa   : > { %v741_v47 = vpop.xlane.xlu1 %740 }
 0x2fb   : > { %v742_v48 = vsub.f32 %v735_v41, %v741_v47 }
 0x2fd   : > { %v743_v49 = vmul.f32 1.442695, %v742_v48 }
 0x2ff   : > { %2051 = vpow2.f32 %v743_v49  ;;  %v1811_v49 = vld [vmem:[%s2759_s6] ss:$0 sm:$0xff] }
 0x309   : > { %v2052_v50 = vpop.eup %2051 }
 0x30a   : > { %1896 = vmatmul.mubr.msk.f32.vlgmr.msra.gmra.mrb[4].mxu1 %vm662_vm2, %v2052_v50  ;;  %v745_v52 = vsel %vm662_vm2, %v2052_v50, 0.0 }
 0x30b   : > { %746 = vadd.xlane.f32.xlu0 %v745_v52  ;;  %1904 = vmatpush3.msra.mxu1 %v912_v51 }
 0x30c   : > { %1905 = vmatprep.mubr.msk.f32.mxu1 %vm2297_vm0, %v2298_v1  ;;  %1913 = vmatprep.subr.mxu1 %v2298_v1 }
 0x321   : > { %1222 = vrot.lane.b32.xlu0 %v2637_v38, %s2300_s21 }
 0x325   : > { %1374 = vrot.lane.b32.xlu0 %v481_v33, %s2301_s22 }
 0x36e   : > { %v903_v53 = vpop.xlane.xlu1 %902 }
 0x36f   : > { %v904_v54 = vsub.f32 %v897_v44, %v903_v53 }
 0x371   : > { %v905_v55 = vmul.f32 1.442695, %v904_v54 }
 0x373   : > { %2053 = vpow2.f32 %v905_v55 }
 0x37d   : > { %v2054_v57 = vpop.eup %2053 }
 0x37e   : > { %1906 = vmatmul.mubr.msk.f32.vlgmr.msra.gmra.mrb[6].mxu1 %vm662_vm2, %v2054_v57  ;;  %v907_v58 = vsel %vm662_vm2, %v2054_v57, 0.0 }
 0x37f   : > { %908 = vadd.xlane.f32.xlu1 %v907_v58  ;;  %1914 = vmatpush3.msra.mxu1 %v658_v56 }
 0x380   : > { %1915 = vmatprep.mubr.msk.f32.mxu1 %vm2297_vm0, %v2298_v1  ;;  %1923 = vmatprep.subr.mxu1 %v2298_v1 }
 0x390   : > { %1135 = vrot.lane.b32.xlu1 %v481_v33, %s2300_s21 }
 0x398   : > { %v747_v61 = vpop.xlane.xlu0 %746 }
 0x399   : > { %2055 = vrcp.f32 %v747_v61 }
 0x39c   : > { %v1223_v3 = vpop.permute.xlu0 %1222 }
 0x3a0   : > { %v1375_v24 = vpop.permute.xlu0 %1374 }
 0x3a3   : > { %v2056_v62 = vpop.eup %2055 }
 0x3dd   : > { %v817_v63 = vpop.f32.mrb[4].mxu1 }
 0x3de   : > { %v822_v0 = vmul.f32 %v2056_v62, %v817_v63  ;;  %v1897_v2 = vpop.f32.mrb[5].mxu1 }
 0x3e0   : > { %1916 = vmatmul.mubr.msk.f32.vlgmr.msra.gmra.mrb[8].mxu1 %vm662_vm2, %v822_v0 }
 0x3e1   : > { %1924 = vmatpush3.msra.mxu1 %v1223_v3  ;;  %1925 = vmatprep.mubr.msk.f32.mxu1 %vm2297_vm0, %v2298_v1 }
 0x3e2   : > { %1933 = vmatprep.subr.mxu1 %v2298_v1 }
 0x40c   : > { %v909_v4 = vpop.xlane.xlu1 %908 }
 0x40d   : > { %2057 = vrcp.f32 %v909_v4 }
 0x410   : > { %v1136_v9 = vpop.permute.xlu1 %1135 }
 0x417   : > { %v2058_v5 = vpop.eup %2057 }
 0x451   : > { %v983_v6 = vpop.f32.mrb[6].mxu1 }
 0x452   : > { %v988_v7 = vmul.f32 %v2058_v5, %v983_v6  ;;  %v1907_v8 = vpop.f32.mrb[7].mxu1 }
 0x454   : > { %1911 = vmatmul.mubr.msk.f32.vlgmr.msra.gmra.mrb[6].mxu0 %vm662_vm2, %v988_v7 }
 0x455   : > { %1919 = vmatpush3.xpose.msk.msra.mxu0 %vm662_vm2, %v1138_v60  ;;  %1920 = vmatprep.mubr.msk.f32.mxu0 %vm2297_vm0, %v2298_v1 }
 0x456   : > { %1928 = vmatprep.subr.mxu0 %v2298_v1 }
 0x458   : > { %1921 = vmatmul.mubr.msk.f32.vlgmr.msra.gmra.mrb[8].mxu0 %vm662_vm2, %v1136_v9 }
 0x459   : > { %1930 = vmatprep.mubr.msk.f32.mxu0 %vm2297_vm0, %v2298_v1  ;;  %1929 = vmatpush3.msra.mxu0 %v660_v25 }
 0x45a   : > { %1938 = vmatprep.subr.mxu0 %v2298_v1 }
 0x4b3   : > { %v1131_v10 = vpop.f32.mrb[8].mxu1 }
 0x4b4   : > { %v1917_v11 = vpop.f32.mrb[9].mxu1 }
 0x527   : > { %v1058_v12 = vpop.f32.mrb[6].mxu0 }
 0x528   : > { %v1132_v13 = vadd.f32 %v1131_v10, %v1058_v12  ;;  %v1912_v14 = vpop.f32.mrb[7].mxu0 }
 0x52b   : > { %v1209_v15 = vpop.f32.mrb[8].mxu0 }
 0x52c   : > { %v1922_v16 = vpop.f32.mrb[9].mxu0  ;;  %v1213_v17 = vsel %vm662_vm2, %v1209_v15, -inf }
 0x52d   : > { %1214 = vmax.xlane.f32.xlu1 %v1213_v17 }
 0x53e   : > { %1376 = vrot.lane.b32.xlu1 %v2625_v32, %s2301_s22 }
 0x5ba   : > { %v1215_v18 = vpop.xlane.xlu1 %1214 }
 0x5bb   : > { %v1216_v19 = vsub.f32 %v1209_v15, %v1215_v18 }
 0x5bd   : > { %v1217_v20 = vmul.f32 1.442695, %v1216_v19 }
 0x5be   : > { %v1377_v22 = vpop.permute.xlu1 %1376 }
 0x5bf   : > { %2059 = vpow2.f32 %v1217_v20 }
 0x5c9   : > { %v2060_v21 = vpop.eup %2059 }
 0x5ca   : > { %1926 = vmatmul.mubr.msk.f32.vlgmr.msra.gmra.mrb[10].mxu1 %vm662_vm2, %v2060_v21  ;;  %v1219_v23 = vsel %vm662_vm2, %v2060_v21, 0.0 }
 0x5cb   : > { %1934 = vmatpush3.xpose.msk.msra.mxu1 %vm662_vm2, %v1377_v22  ;;  %1220 = vadd.xlane.f32.xlu0 %v1219_v23 }
 0x5cc   : > { %1935 = vmatprep.mubr.msk.f32.mxu1 %vm2297_vm0, %v2298_v1  ;;  %1943 = vmatprep.subr.mxu1 %v2298_v1 }
 0x5ce   : > { %1936 = vmatmul.mubr.msk.f32.vlgmr.msra.gmra.mrb[12].mxu1 %vm662_vm2, %v1375_v24 }
 0x5cf   : > { %1945 = vmatprep.mubr.msk.f32.mxu1 %vm2297_vm0, %v2298_v1  ;;  %1944 = vmatpush3.msra.mxu1 %v661_v40 }
 0x5e1   : > { %1461 = vrot.lane.b32.xlu0 %v2637_v38, %s2301_s22 }
 0x658   : > { %v1221_v26 = vpop.xlane.xlu0 %1220 }
 0x659   : > { %2061 = vrcp.f32 %v1221_v26 }
 0x65c   : > { %v1462_v31 = vpop.permute.xlu0 %1461 }
 0x663   : > { %v2062_v27 = vpop.eup %2061 }
 0x69d   : > { %v1294_v28 = vpop.f32.mrb[10].mxu1 }
 0x69e   : > { %v1299_v29 = vmul.f32 %v2062_v27, %v1294_v28  ;;  %v1927_v30 = vpop.f32.mrb[11].mxu1 }
 0x6a0   : > { %1931 = vmatmul.mubr.msk.f32.vlgmr.msra.gmra.mrb[10].mxu0 %vm662_vm2, %v1299_v29 }
 0x6a1   : > { %1939 = vmatpush3.msra.mxu0 %v1462_v31  ;;  %v1448_v32 = vpop.f32.mrb[12].mxu1  ;;  %1940 = vmatprep.mubr.msk.f32.mxu0 %vm2297_vm0, %v2298_v1 }
 0x6a2   : > { %v1937_v33 = vpop.f32.mrb[13].mxu1  ;;  %v1452_v34 = vsel %vm662_vm2, %v1448_v32, -inf }
 0x6a3   : > { %1453 = vmax.xlane.f32.xlu1 %v1452_v34 }
 0x730   : > { %v1454_v35 = vpop.xlane.xlu1 %1453 }
 0x731   : > { %v1455_v36 = vsub.f32 %v1448_v32, %v1454_v35 }
 0x733   : > { %v1456_v37 = vmul.f32 1.442695, %v1455_v36 }
 0x735   : > { %2063 = vpow2.f32 %v1456_v37 }
 0x73f   : > { %v2064_v38 = vpop.eup %2063 }
 0x740   : > { %1941 = vmatmul.mubr.msk.f32.vlgmr.msra.gmra.mrb[12].mxu0 %vm662_vm2, %v2064_v38  ;;  %v1458_v39 = vsel %vm662_vm2, %v2064_v38, 0.0 }
 0x741   : > { %1459 = vadd.xlane.f32.xlu1 %v1458_v39 }
 0x773   : > { %v1369_v41 = vpop.f32.mrb[10].mxu0 }
 0x774   : > { %v1373_v1 = vadd.f32 %v1369_v41, %v1132_v13  ;;  %v1932_v42 = vpop.f32.mrb[11].mxu0 }
 0x7ce   : > { %v1460_v43 = vpop.xlane.xlu1 %1459 }
 0x7cf   : > { %2065 = vrcp.f32 %v1460_v43 }
 0x7d9   : > { %v2066_v44 = vpop.eup %2065 }
 0x813   : > { %v1533_v45 = vpop.f32.mrb[12].mxu0 }
 0x814   : > { %v1538_v46 = vmul.f32 %v2066_v44, %v1533_v45  ;;  %v1942_v47 = vpop.f32.mrb[13].mxu0 }
 0x816   : > { %1946 = vmatmul.mubr.msk.f32.vlgmr.msra.gmra.mrb[14].mxu1 %vm662_vm2, %v1538_v46 }
 0x8e9   : > { %v1608_v48 = vpop.f32.mrb[14].mxu1 }
 0x8ea   : > { %v1612_v50 = vadd.f32 %v1608_v48, %v1373_v1  ;;  %v1947_v51 = vpop.f32.mrb[15].mxu1 }
 0x8ec   : > { %v1620_v52 = vadd.f32 %v1811_v49, %v1612_v50 }
 0x8ee   : > { %v1621_v53 = vmax.f32 %v1620_v52, 0.0 }
 0x8f0   : > { %1622 = vst.msk [vmem:[%s393_s15] sm:$0xff] %vm406_vm1, %v1621_v53 }
 0x8f1   : > { %2226 = shalt.err (!%p2223_p2)
}
 0x8f2   : > { %s2227_s3 = scalar_lea.hbm %s2708_s27, 128  ;;  %s2231_s14 = scalar_lea.hbm %s2760_s7, 256 }
 0x8f3   : > { %p2228_p5 = scmp.ne.s32.totalorder %s2708_s27, %s2227_s3  ;;  %p2232_p0 = scmp.lt.u32.totalorder %s2708_s27, %s2760_s7 }
 0x8f4   : > { %p2233_p7 = scmp.lt.u32.totalorder %s2231_s14, %s2227_s3  ;;  %p2235_p6 = scmp.lt.u32.totalorder %s2227_s3, %s2708_s27 }
 0x8f5   : > { %p2229_p12 = pnand %p2228_p5, %p2806_p10 }
 0x8f6   : > { %p2234_p1 = por %p2233_p7, %p2232_p0 }
 0x8f7   : > { %p2230_p3 = pneg %p2229_p12 }
 0x8f8   : > { %p2236_p8 = por %p2235_p6, %p2234_p1 }
 0x8fa   : > { %p2237_p9 = pnand %p2236_p8, %p2230_p3 }
 0x8fc   : > { %2240 = shalt.err (!%p2237_p9)
}
 0x8fd   : > { %1980 = dma.vmem_to_hbm [thread:$0]  (%p2806_p10), %s2710_s9, 128, %s2708_s27, %s1624_s30  }
 0x8fe PF: > { %s2807_s22 = sld [smem:[#allocation16_spill]]  ;;  %s1649_s18 = sand.u32 1, %s2275_s24  }
 0x8ff   : > { %p2808_p11 = scmp.ne.s32.totalorder %s2782_s8, 0  ;;  %s1650_s16 = scalar_lea.sflag [#allocation4], %s1649_s18 }
 0x904   : > { %p2809_p4 = scmp.ge.s32.totalorder %s2807_s22, 2 }
 0x906   : > { %p2000_p13 = pnand %p2809_p4, %p2808_p11 }
 0x908   : > { %2270 = dma.done.wait (!%p2000_p13), %s1650_s16, 128  }
 0x909   : > { %2272 = vsyncadd (!%p2000_p13), %s1650_s16, 4294967168  ;;  %s2810_s27 = sld [smem:[#allocation17_spill]]  ;;  %s2811_s10 = sld [smem:[#allocation18_spill]] }
 0x90a   : > { %s2812_s24 = smov %s2279_s25  ;;  %s2813_s25 = smov %s2283_s26 }
 0x90f   : > { %p24_p2 = scmp.ge.s32.totalorder %s2810_s27, 4   ;;  %s2814_s26 = smov %s2811_s10 }
 0x911   :  { %26 = sbr.rel (!%p24_p2) target bundleno = 11 (0xb), region = 129 }
 0x918   :  { %1655 = vsyncpa [#allocation3], 1 }
 0x919   :  { %1657 = vsyncpa [#allocation3 + $0x1], 1 }
 0x91a   :  { %1658 = vsyncpa [#allocation6], 1 }
 0x91b   :  { %1660 = vsyncpa [#allocation6 + $0x1], 1 }
 0x91c   :  { %1661 = vsyncpa [#allocation9], 1 }
 0x91d   :  { %1662 = vsyncpa [#allocation4], 1 }
 0x91e   :  { %1664 = vsyncpa [#allocation4 + $0x1], 1 }

</bundles_post_ra>
